<compile_context>
chip_gen: v7x
topology: tpu7x:2x2x1
jax: 0.10.0
libtpu: 0.0.40
codegen_flags: <defaults>
</compile_context>

<pallas_src>
import functools

import jax
import jax.numpy as jnp
from jax.experimental import pallas as pl
from jax.experimental.pallas import tpu as pltpu

INF = 1.0e9       # matches the torch forward's default `inf`
LANE = 128        # TPU vreg lane width


def _round_up(x, m):
    return (x + m - 1) // m * m


# --------------------------------------------------------------------------- #
# Kernel
# --------------------------------------------------------------------------- #
def _critic_kernel(x_ref, mask_ref,
                   w1_ref, b1_ref,
                   w2_ref, b2_ref,
                   w3_ref, b3_ref,
                   w4_ref, b4_ref,
                   w5_ref, b5_ref,
                   q_ref, hq_ref, *, max_job):
    # Layer 1: single fused matmul on the pre-packed [state | preference | 0pad]
    # input (padded rows of w1 are zero, so the math equals the torch concat).
    h = (jnp.dot(x_ref[...], w1_ref[...], preferred_element_type=jnp.float32)
         + b1_ref[...])
    h = jnp.maximum(h, 0.0)

    # Layers 2-4: bf16 MXU inputs, f32 accumulation / elementwise.
    for w_ref, b_ref in ((w2_ref, b2_ref), (w3_ref, b3_ref), (w4_ref, b4_ref)):
        h = jnp.dot(h.astype(w_ref.dtype), w_ref[...],
                    preferred_element_type=jnp.float32) + b_ref[...]
        h = jnp.maximum(h, 0.0)

    # Layer 5 (lane-dense MXU result), then slice to the real action columns.
    q_full = jnp.dot(h.astype(w5_ref.dtype), w5_ref[...],
                     preferred_element_type=jnp.float32) + b5_ref[...]

    # Action mask in f32 (1e9-scale values must never see bf16).
    q = q_full[:, :max_job] + INF * mask_ref[...].astype(jnp.float32)
    q_ref[...] = q

    # hq = q.max(dim=1); q already holds only the real columns.
    hq_ref[...] = jnp.max(q, axis=1, keepdims=True)


# --------------------------------------------------------------------------- #
# Parameter preparation (fused w1, pad feature dims to lane multiples, bf16)
# --------------------------------------------------------------------------- #
def prepare_params(params, compute_dtype=jnp.bfloat16):
    """Zero-pad feature dims to multiples of 128 (w1 rows padded to match the
    packed [state|preference] input), cast weights to `compute_dtype` (MXU
    inputs). Biases stay f32."""
    w = [params[f"w{i}"].astype(jnp.float32) for i in range(1, 6)]
    b = [params[f"b{i}"].astype(jnp.float32) for i in range(1, 6)]

    d_in, h1 = w[0].shape
    h2, h3, h4, d_out = w[1].shape[1], w[2].shape[1], w[3].shape[1], w[4].shape[1]
    DP = _round_up(d_in, LANE)
    H1, H2, H3, H4 = (_round_up(h, LANE) for h in (h1, h2, h3, h4))
    NP = _round_up(d_out, LANE)

    def pad(a, rows, cols):
        return jnp.pad(a, ((0, rows - a.shape[0]), (0, cols - a.shape[1])))

    return {
        "w1": pad(w[0], DP, H1).astype(compute_dtype), "b1": pad(b[0], 1, H1),
        "w2": pad(w[1], H1, H2).astype(compute_dtype), "b2": pad(b[1], 1, H2),
        "w3": pad(w[2], H2, H3).astype(compute_dtype), "b3": pad(b[2], 1, H3),
        "w4": pad(w[3], H3, H4).astype(compute_dtype), "b4": pad(b[3], 1, H4),
        "w5": pad(w[4], H4, NP).astype(compute_dtype), "b5": pad(b[4], 1, NP),
    }


# --------------------------------------------------------------------------- #
# Forward wrapper
# --------------------------------------------------------------------------- #
def critic_forward(state, mask, preference, prep, max_job, *, batch_tile=1024):
    """Pallas forward of CriticNetwork_dqn2019.

    Returns (hq, q): hq shape (B,), q shape (B, max_job)."""
    B = state.shape[0]
    compute_dtype = prep["w1"].dtype
    DP, H1 = prep["w1"].shape
    H2, H3, H4, NP = (prep[k].shape[1] for k in ("w2", "w3", "w4", "w5"))

    # Pack [state | preference] into one lane-dense, zero-padded bf16 input
    # (fuses the torch concat + dtype cast into a single wrapper pass).
    x = jnp.concatenate([state, preference], axis=1).astype(compute_dtype)
    x = jnp.pad(x, ((0, 0), (0, DP - x.shape[1])))
    # Mask values are exactly 0 / -1, so bf16 transport is lossless; the INF
    # multiply/add happens in f32 inside the kernel.
    mask_c = mask.astype(compute_dtype)

    # Batch tile: >=2 grid steps whenever the batch allows, so the "parallel"
    # axis spans both v7x TensorCores (v5e/v6e unaffected).
    TB = min(batch_tile, B)
    if TB == B and B >= 16:
        TB = _round_up(pl.cdiv(B, 2), 8)
    grid = (pl.cdiv(B, TB),)

    def tiled(cols):
        return pl.BlockSpec((TB, cols), lambda i: (i, 0))

    def resident(a):  # constant index_map -> stays resident in VMEM
        return pl.BlockSpec(a.shape, lambda i: (0, 0))

    weight_keys = ("w1", "b1", "w2", "b2", "w3", "b3", "w4", "b4", "w5", "b5")
    weights = [prep[k] for k in weight_keys]

    in_specs = [tiled(DP), tiled(max_job)] + [resident(a) for a in weights]
    out_specs = (tiled(max_job), tiled(1))

    flops = 2 * B * (DP * H1 + H1 * H2 + H2 * H3 + H3 * H4 + H4 * NP)
    operands = [x, mask_c] + weights
    bytes_accessed = (sum(int(a.size) * a.dtype.itemsize for a in operands)
                      + B * max_job * 4 + B * 4)

    q, hq = pl.pallas_call(
        functools.partial(_critic_kernel, max_job=max_job),
        grid=grid,
        in_specs=in_specs,
        out_specs=out_specs,
        out_shape=(
            jax.ShapeDtypeStruct((B, max_job), jnp.float32),
            jax.ShapeDtypeStruct((B, 1), jnp.float32),
        ),
        compiler_params=pltpu.CompilerParams(
            dimension_semantics=("parallel",)),
        cost_estimate=pl.CostEstimate(
            flops=flops, transcendentals=0, bytes_accessed=bytes_accessed),
    )(x, mask_c, *weights)

    return hq[:, 0], q


# --------------------------------------------------------------------------- #
# Init + reference + demo
# --------------------------------------------------------------------------- #
def init_params(key, input_size, max_job, reward_size):
    """Deterministic init matching the torch module's layer shapes."""
    d_in = input_size * max_job + reward_size
    h1 = (input_size + reward_size) * 16
    h2 = (input_size + reward_size) * 32
    h3 = (input_size + reward_size) * 64
    h4 = (input_size + reward_size) * 32
    dims = [(d_in, h1), (h1, h2), (h2, h3), (h3, h4), (h4, max_job)]
    params = {}
    for i, (din, dout) in enumerate(dims, start=1):
        key, kw, kb = jax.random.split(key, 3)
        bound = 1.0 / float(din) ** 0.5
        params[f"w{i}"] = jax.random.uniform(
            kw, (din, dout), jnp.float32, minval=-bound, maxval=bound)
        params[f"b{i}"] = jax.random.uniform(
            kb, (1, dout), jnp.float32, minval=-bound, maxval=bound)
    return params


def _reference(state, mask, preference, prep, max_job):
    """Plain-JAX reference computing the same math as the kernel
    (same prepared bf16 weights, f32 accumulation)."""
    f32 = jnp.float32
    cd = prep["w1"].dtype

    x = jnp.concatenate([state, preference], axis=1)
    x = jnp.pad(x, ((0, 0), (0, prep["w1"].shape[0] - x.shape[1])))

    def rnd(v):  # mimic the kernel's cast of MXU inputs
        return v.astype(cd).astype(f32)

    h = rnd(x) @ prep["w1"].astype(f32) + prep["b1"]
    h = jnp.maximum(h, 0.0)
    for i in (2, 3, 4):
        h = jnp.maximum(rnd(h) @ prep[f"w{i}"].astype(f32) + prep[f"b{i}"], 0.0)
    q = rnd(h) @ prep["w5"].astype(f32) + prep["b5"]
    q = q[:, :max_job] + INF * mask
    return q.max(axis=1), q


if __name__ == "__main__":
    # Small shapes consistent with the module: input_size=4, max_job=8,
    # reward_size=2, batch=2.
    input_size, max_job, reward_size, B = 4, 8, 2, 2

    key = jax.random.PRNGKey(0)
    key, ks, kp, km = jax.random.split(key, 4)

    state = jax.random.normal(ks, (B, max_job * input_size), jnp.float32)
    preference = jax.random.normal(kp, (B, reward_size), jnp.float32)
    # mask: 0 for valid actions, -1 for invalid (as used with q + inf*mask)
    mask = -(jax.random.uniform(km, (B, max_job)) < 0.3).astype(jnp.float32)

    params = init_params(jax.random.PRNGKey(0), input_size, max_job, reward_size)
    prep = prepare_params(params)

    hq, q = critic_forward(state, mask, preference, prep, max_job)
    jax.block_until_ready((hq, q))

    hq_ref, q_ref = _reference(state, mask, preference, prep, max_job)
    assert q.shape == (B, max_job) and hq.shape == (B,)
    assert jnp.allclose(q, q_ref, rtol=1e-3, atol=1e-3)
    assert jnp.allclose(hq, hq_ref, rtol=1e-3, atol=1e-3)

    print("KERNEL_OK")
</pallas_src>

<mosaic_0001>
module attributes {stable_mosaic.version = 11 : i64} {
  func.func @_critic_kernel(%arg0: i32, %arg1: memref<2x128xbf16, #tpu.memory_space<vmem>>, %arg2: memref<2x8xbf16, #tpu.memory_space<vmem>>, %arg3: memref<128x128xbf16, #tpu.memory_space<vmem>>, %arg4: memref<1x128xf32, #tpu.memory_space<vmem>>, %arg5: memref<128x256xbf16, #tpu.memory_space<vmem>>, %arg6: memref<1x256xf32, #tpu.memory_space<vmem>>, %arg7: memref<256x384xbf16, #tpu.memory_space<vmem>>, %arg8: memref<1x384xf32, #tpu.memory_space<vmem>>, %arg9: memref<384x256xbf16, #tpu.memory_space<vmem>>, %arg10: memref<1x256xf32, #tpu.memory_space<vmem>>, %arg11: memref<256x128xbf16, #tpu.memory_space<vmem>>, %arg12: memref<1x128xf32, #tpu.memory_space<vmem>>, %arg13: memref<2x8xf32, #tpu.memory_space<vmem>>, %arg14: memref<2x1xf32, #tpu.memory_space<vmem>>) attributes {dimension_semantics = [#tpu.dimension_semantics<parallel>], iteration_bounds = array<i64: 1>, scalar_prefetch = 0 : i64, scratch_operands = 0 : i64, tpu.core_type = #tpu.core_type<tc>, window_params = [{transform_indices = @transform_0, window_bounds = array<i64: 2, 128>}, {transform_indices = @transform_1, window_bounds = array<i64: 2, 8>}, {pipeline_mode = #tpu.pipeline_mode<synchronous>, transform_indices = @transform_2, window_bounds = array<i64: 128, 128>}, {pipeline_mode = #tpu.pipeline_mode<synchronous>, transform_indices = @transform_3, window_bounds = array<i64: 1, 128>}, {pipeline_mode = #tpu.pipeline_mode<synchronous>, transform_indices = @transform_4, window_bounds = array<i64: 128, 256>}, {pipeline_mode = #tpu.pipeline_mode<synchronous>, transform_indices = @transform_5, window_bounds = array<i64: 1, 256>}, {pipeline_mode = #tpu.pipeline_mode<synchronous>, transform_indices = @transform_6, window_bounds = array<i64: 256, 384>}, {pipeline_mode = #tpu.pipeline_mode<synchronous>, transform_indices = @transform_7, window_bounds = array<i64: 1, 384>}, {pipeline_mode = #tpu.pipeline_mode<synchronous>, transform_indices = @transform_8, window_bounds = array<i64: 384, 256>}, {pipeline_mode = #tpu.pipeline_mode<synchronous>, transform_indices = @transform_9, window_bounds = array<i64: 1, 256>}, {pipeline_mode = #tpu.pipeline_mode<synchronous>, transform_indices = @transform_10, window_bounds = array<i64: 256, 128>}, {pipeline_mode = #tpu.pipeline_mode<synchronous>, transform_indices = @transform_11, window_bounds = array<i64: 1, 128>}, {transform_indices = @transform_12, window_bounds = array<i64: 2, 8>}, {transform_indices = @transform_13, window_bounds = array<i64: 2, 1>}]} {
    %c0 = arith.constant 0 : index
    %c0_0 = arith.constant 0 : index
    %0 = vector.load %arg1[%c0, %c0_0] : memref<2x128xbf16, #tpu.memory_space<vmem>>, vector<2x128xbf16>
    %c0_1 = arith.constant 0 : index
    %c0_2 = arith.constant 0 : index
    %1 = vector.load %arg3[%c0_1, %c0_2] : memref<128x128xbf16, #tpu.memory_space<vmem>>, vector<128x128xbf16>
    %cst = arith.constant dense<0.000000e+00> : vector<2x128xf32>
    %2 = tpu.matmul %0, %1, %cst {dimension_numbers = #tpu.dot_dimension_numbers<[1], [0], [0], [1], [0, 0, 1, 1], [], []>} : vector<2x128xbf16>, vector<128x128xbf16>, vector<2x128xf32> -> vector<2x128xf32>
    %c0_3 = arith.constant 0 : index
    %c0_4 = arith.constant 0 : index
    %3 = vector.load %arg4[%c0_3, %c0_4] : memref<1x128xf32, #tpu.memory_space<vmem>>, vector<1x128xf32>
    %4 = vector.broadcast %3 : vector<1x128xf32> to vector<2x128xf32>
    %5 = arith.addf %2, %4 : vector<2x128xf32>
    %cst_5 = arith.constant 0.000000e+00 : f32
    %6 = vector.broadcast %cst_5 : f32 to vector<2x128xf32>
    %7 = arith.maximumf %5, %6 : vector<2x128xf32>
    %8 = arith.truncf %7 : vector<2x128xf32> to vector<2x128xbf16>
    %c0_6 = arith.constant 0 : index
    %c0_7 = arith.constant 0 : index
    %9 = vector.load %arg5[%c0_6, %c0_7] : memref<128x256xbf16, #tpu.memory_space<vmem>>, vector<128x256xbf16>
    %cst_8 = arith.constant dense<0.000000e+00> : vector<2x256xf32>
    %10 = tpu.matmul %8, %9, %cst_8 {dimension_numbers = #tpu.dot_dimension_numbers<[1], [0], [0], [1], [0, 0, 1, 1], [], []>} : vector<2x128xbf16>, vector<128x256xbf16>, vector<2x256xf32> -> vector<2x256xf32>
    %c0_9 = arith.constant 0 : index
    %c0_10 = arith.constant 0 : index
    %11 = vector.load %arg6[%c0_9, %c0_10] : memref<1x256xf32, #tpu.memory_space<vmem>>, vector<1x256xf32>
    %12 = vector.broadcast %11 : vector<1x256xf32> to vector<2x256xf32>
    %13 = arith.addf %10, %12 : vector<2x256xf32>
    %cst_11 = arith.constant 0.000000e+00 : f32
    %14 = vector.broadcast %cst_11 : f32 to vector<2x256xf32>
    %15 = arith.maximumf %13, %14 : vector<2x256xf32>
    %16 = arith.truncf %15 : vector<2x256xf32> to vector<2x256xbf16>
    %c0_12 = arith.constant 0 : index
    %c0_13 = arith.constant 0 : index
    %17 = vector.load %arg7[%c0_12, %c0_13] : memref<256x384xbf16, #tpu.memory_space<vmem>>, vector<256x384xbf16>
    %cst_14 = arith.constant dense<0.000000e+00> : vector<2x384xf32>
    %18 = tpu.matmul %16, %17, %cst_14 {dimension_numbers = #tpu.dot_dimension_numbers<[1], [0], [0], [1], [0, 0, 1, 1], [], []>} : vector<2x256xbf16>, vector<256x384xbf16>, vector<2x384xf32> -> vector<2x384xf32>
    %c0_15 = arith.constant 0 : index
    %c0_16 = arith.constant 0 : index
    %19 = vector.load %arg8[%c0_15, %c0_16] : memref<1x384xf32, #tpu.memory_space<vmem>>, vector<1x384xf32>
    %20 = vector.broadcast %19 : vector<1x384xf32> to vector<2x384xf32>
    %21 = arith.addf %18, %20 : vector<2x384xf32>
    %cst_17 = arith.constant 0.000000e+00 : f32
    %22 = vector.broadcast %cst_17 : f32 to vector<2x384xf32>
    %23 = arith.maximumf %21, %22 : vector<2x384xf32>
    %24 = arith.truncf %23 : vector<2x384xf32> to vector<2x384xbf16>
    %c0_18 = arith.constant 0 : index
    %c0_19 = arith.constant 0 : index
    %25 = vector.load %arg9[%c0_18, %c0_19] : memref<384x256xbf16, #tpu.memory_space<vmem>>, vector<384x256xbf16>
    %cst_20 = arith.constant dense<0.000000e+00> : vector<2x256xf32>
    %26 = tpu.matmul %24, %25, %cst_20 {dimension_numbers = #tpu.dot_dimension_numbers<[1], [0], [0], [1], [0, 0, 1, 1], [], []>} : vector<2x384xbf16>, vector<384x256xbf16>, vector<2x256xf32> -> vector<2x256xf32>
    %c0_21 = arith.constant 0 : index
    %c0_22 = arith.constant 0 : index
    %27 = vector.load %arg10[%c0_21, %c0_22] : memref<1x256xf32, #tpu.memory_space<vmem>>, vector<1x256xf32>
    %28 = vector.broadcast %27 : vector<1x256xf32> to vector<2x256xf32>
    %29 = arith.addf %26, %28 : vector<2x256xf32>
    %cst_23 = arith.constant 0.000000e+00 : f32
    %30 = vector.broadcast %cst_23 : f32 to vector<2x256xf32>
    %31 = arith.maximumf %29, %30 : vector<2x256xf32>
    %32 = arith.truncf %31 : vector<2x256xf32> to vector<2x256xbf16>
    %c0_24 = arith.constant 0 : index
    %c0_25 = arith.constant 0 : index
    %33 = vector.load %arg11[%c0_24, %c0_25] : memref<256x128xbf16, #tpu.memory_space<vmem>>, vector<256x128xbf16>
    %cst_26 = arith.constant dense<0.000000e+00> : vector<2x128xf32>
    %34 = tpu.matmul %32, %33, %cst_26 {dimension_numbers = #tpu.dot_dimension_numbers<[1], [0], [0], [1], [0, 0, 1, 1], [], []>} : vector<2x256xbf16>, vector<256x128xbf16>, vector<2x128xf32> -> vector<2x128xf32>
    %c0_27 = arith.constant 0 : index
    %c0_28 = arith.constant 0 : index
    %35 = vector.load %arg12[%c0_27, %c0_28] : memref<1x128xf32, #tpu.memory_space<vmem>>, vector<1x128xf32>
    %36 = vector.broadcast %35 : vector<1x128xf32> to vector<2x128xf32>
    %37 = arith.addf %34, %36 : vector<2x128xf32>
    %38 = vector.extract_strided_slice %37 {offsets = [0, 0], sizes = [2, 8], strides = [1, 1]} : vector<2x128xf32> to vector<2x8xf32>
    %c0_29 = arith.constant 0 : index
    %c0_30 = arith.constant 0 : index
    %39 = vector.load %arg2[%c0_29, %c0_30] : memref<2x8xbf16, #tpu.memory_space<vmem>>, vector<2x8xbf16>
    %40 = arith.extf %39 : vector<2x8xbf16> to vector<2x8xf32>
    %cst_31 = arith.constant 1.000000e+09 : f32
    %41 = vector.broadcast %cst_31 : f32 to vector<2x8xf32>
    %42 = arith.mulf %41, %40 : vector<2x8xf32>
    %43 = arith.addf %38, %42 : vector<2x8xf32>
    %c0_32 = arith.constant 0 : index
    %c0_33 = arith.constant 0 : index
    %44 = vector.load %arg13[%c0_32, %c0_33] : memref<2x8xf32, #tpu.memory_space<vmem>>, vector<2x8xf32>
    tpu.vector_store %arg13[%c0_32, %c0_33], %43 {strides = array<i32>} : memref<2x8xf32, #tpu.memory_space<vmem>>, vector<2x8xf32>,
    %cst_34 = arith.constant dense<0xFF800000> : vector<2xf32>
    %45 = vector.multi_reduction <maximumf>, %43, %cst_34 [1] : vector<2x8xf32> to vector<2xf32>
    %46 = vector.shape_cast %45 : vector<2xf32> to vector<2x1xf32>
    %c0_35 = arith.constant 0 : index
    %c0_36 = arith.constant 0 : index
    %47 = vector.load %arg14[%c0_35, %c0_36] : memref<2x1xf32, #tpu.memory_space<vmem>>, vector<2x1xf32>
    tpu.vector_store %arg14[%c0_35, %c0_36], %46 {strides = array<i32>} : memref<2x1xf32, #tpu.memory_space<vmem>>, vector<2x1xf32>,
    return
  }
  func.func @transform_0(%arg0: i32) -> (i32, i32) {
    %c0_i32 = arith.constant 0 : i32
    %c0_i32_0 = arith.constant 0 : i32
    return %arg0, %c0_i32 : i32, i32
  }
  func.func @transform_1(%arg0: i32) -> (i32, i32) {
    %c0_i32 = arith.constant 0 : i32
    %c0_i32_0 = arith.constant 0 : i32
    return %arg0, %c0_i32 : i32, i32
  }
  func.func @transform_2(%arg0: i32) -> (i32, i32) {
    %c0_i32 = arith.constant 0 : i32
    %c0_i32_0 = arith.constant 0 : i32
    %c0_i32_1 = arith.constant 0 : i32
    return %c0_i32, %c0_i32_0 : i32, i32
  }
  func.func @transform_3(%arg0: i32) -> (i32, i32) {
    %c0_i32 = arith.constant 0 : i32
    %c0_i32_0 = arith.constant 0 : i32
    %c0_i32_1 = arith.constant 0 : i32
    return %c0_i32, %c0_i32_0 : i32, i32
  }
  func.func @transform_4(%arg0: i32) -> (i32, i32) {
    %c0_i32 = arith.constant 0 : i32
    %c0_i32_0 = arith.constant 0 : i32
    %c0_i32_1 = arith.constant 0 : i32
    return %c0_i32, %c0_i32_0 : i32, i32
  }
  func.func @transform_5(%arg0: i32) -> (i32, i32) {
    %c0_i32 = arith.constant 0 : i32
    %c0_i32_0 = arith.constant 0 : i32
    %c0_i32_1 = arith.constant 0 : i32
    return %c0_i32, %c0_i32_0 : i32, i32
  }
  func.func @transform_6(%arg0: i32) -> (i32, i32) {
    %c0_i32 = arith.constant 0 : i32
    %c0_i32_0 = arith.constant 0 : i32
    %c0_i32_1 = arith.constant 0 : i32
    return %c0_i32, %c0_i32_0 : i32, i32
  }
  func.func @transform_7(%arg0: i32) -> (i32, i32) {
    %c0_i32 = arith.constant 0 : i32
    %c0_i32_0 = arith.constant 0 : i32
    %c0_i32_1 = arith.constant 0 : i32
    return %c0_i32, %c0_i32_0 : i32, i32
  }
  func.func @transform_8(%arg0: i32) -> (i32, i32) {
    %c0_i32 = arith.constant 0 : i32
    %c0_i32_0 = arith.constant 0 : i32
    %c0_i32_1 = arith.constant 0 : i32
    return %c0_i32, %c0_i32_0 : i32, i32
  }
  func.func @transform_9(%arg0: i32) -> (i32, i32) {
    %c0_i32 = arith.constant 0 : i32
    %c0_i32_0 = arith.constant 0 : i32
    %c0_i32_1 = arith.constant 0 : i32
    return %c0_i32, %c0_i32_0 : i32, i32
  }
  func.func @transform_10(%arg0: i32) -> (i32, i32) {
    %c0_i32 = arith.constant 0 : i32
    %c0_i32_0 = arith.constant 0 : i32
    %c0_i32_1 = arith.constant 0 : i32
    return %c0_i32, %c0_i32_0 : i32, i32
  }
  func.func @transform_11(%arg0: i32) -> (i32, i32) {
    %c0_i32 = arith.constant 0 : i32
    %c0_i32_0 = arith.constant 0 : i32
    %c0_i32_1 = arith.constant 0 : i32
    return %c0_i32, %c0_i32_0 : i32, i32
  }
  func.func @transform_12(%arg0: i32) -> (i32, i32) {
    %c0_i32 = arith.constant 0 : i32
    %c0_i32_0 = arith.constant 0 : i32
    return %arg0, %c0_i32 : i32, i32
  }
  func.func @transform_13(%arg0: i32) -> (i32, i32) {
    %c0_i32 = arith.constant 0 : i32
    %c0_i32_0 = arith.constant 0 : i32
    return %arg0, %c0_i32 : i32, i32
  }
}

</mosaic_0001>

<bundles_post_ra>
// kernel: tpu_custom_call.1
= control target key start
LH: loop header
LB: loop body
LE: loop exit
PB: predicated region body
PF: predicated region fallthrough
CT: control target
= control target key end

     0   :  { %19 = vsyncpa [#allocation3], 0  ;;  %s2256_s0 = inlined_call_operand.hbm [shape: bf16[2,128], index: 0, kind: input, shape index: {}]   ;;  %s2257_s1 = inlined_call_operand.hbm [shape: bf16[2,8], index: 1, kind: input, shape index: {}]   ;;  %s2258_s2 = inlined_call_operand.hbm [shape: bf16[128,128], index: 2, kind: input, shape index: {}]   ;;  %s2259_s3 = inlined_call_operand.vmem [shape: f32[1,128], index: 3, kind: input, shape index: {}]   ;;  %s2260_s4 = inlined_call_operand.hbm [shape: bf16[128,256], index: 4, kind: input, shape index: {}]   ;;  %s2261_s5 = inlined_call_operand.vmem [shape: f32[1,256], index: 5, kind: input, shape index: {}]   ;;  %s2262_s6 = inlined_call_operand.hbm [shape: bf16[256,384], index: 6, kind: input, shape index: {}]   ;;  %s2263_s7 = inlined_call_operand.vmem [shape: f32[1,384], index: 7, kind: input, shape index: {}]   ;;  %s2264_s8 = inlined_call_operand.hbm [shape: bf16[384,256], index: 8, kind: input, shape index: {}]   ;;  %s2265_s9 = inlined_call_operand.vmem [shape: f32[1,256], index: 9, kind: input, shape index: {}]   ;;  %s2266_s10 = inlined_call_operand.hbm [shape: bf16[256,128], index: 10, kind: input, shape index: {}]   ;;  %s2267_s11 = inlined_call_operand.vmem [shape: f32[1,128], index: 11, kind: input, shape index: {}]   ;;  %s2268_s12 = inlined_call_operand.hbm [shape: f32[2,8], index: 12, kind: output, shape index: {0}]   ;;  %s2269_s13 = inlined_call_operand.vmem [shape: f32[2,1], index: 13, kind: output, shape index: {1}]  }
   0x1   :  { %20 = vsyncpa [#allocation6], 0 }
   0x2   :  { %21 = vsyncpa [#allocation9], 0 }
   0x3   :  { %22 = vsyncpa [#allocation12], 0 }
   0x4   :  { %23 = vsyncpa [#allocation4], 0  ;;  %s2025_s25 = smov [#allocation5]   ;;  %s2026_s27 = smov [#allocation8]  }
   0x5   :  { %s40_s26 = sshll.u32 %s2025_s25, 4  ;;  %s63_s28 = sshll.u32 %s2026_s27, 4  ;;  %s41_s26 = int_to_ptr.vmem [resolvable:$true] %s40_s26  ;;  %s2112_s28 = int_to_ptr.vmem [resolvable:$true] %s63_s28 }
   0x6   :  { %s1839_s14 = scalar_lea.hbm %s2257_s1, 16 }
   0x7   :  { %p1840_p0 = scmp.ne.s32.totalorder %s2257_s1, %s1839_s14  ;;  %p1843_p1 = scmp.lt.u32.totalorder %s1839_s14, %s2257_s1 }
   0x9   :  { %p1845_p2 = pnand %p1843_p1, %p1840_p0 }
   0xb   :  { %1848 = shalt.err (!%p1845_p2)
}
   0xc   :  { %s1849_s19 = scalar_lea.vmem %s41_s26, 16  ;;  %s1853_s20 = scalar_lea.vmem %s41_s26, 32 }
   0xd   :  { %p1850_p3 = scmp.ne.s32.totalorder %s41_s26, %s1849_s19  ;;  %p1854_p4 = scmp.lt.s32.totalorder %s41_s26, %s41_s26 }
   0xe   :  { %p1855_p5 = scmp.lt.s32.totalorder %s1853_s20, %s1849_s19 }
  0x10   :  { %p1856_p6 = por %p1855_p5, %p1854_p4 }
  0x12   :  { %p1857_p7 = pnand %p1856_p6, %p1850_p3 }
  0x14   :  { %1860 = shalt.err (!%p1857_p7)
}
  0x15   :  { %43 = dma.hbm_to_vmem [thread:$0]  %s2257_s1, 16, %s41_s26, [#allocation6]  }
  0x16   :  { %s1861_s25 = scalar_lea.hbm %s2260_s4, 2048 }
  0x17   :  { %p1862_p8 = scmp.ne.s32.totalorder %s2260_s4, %s1861_s25  ;;  %p1865_p9 = scmp.lt.u32.totalorder %s1861_s25, %s2260_s4 }
  0x19   :  { %p1867_p10 = pnand %p1865_p9, %p1862_p8 }
  0x1b   :  { %1870 = shalt.err (!%p1867_p10)
}
  0x1c   :  { %s1871_s15 = scalar_lea.vmem %s2112_s28, 2048  ;;  %p1876_p12 = scmp.lt.s32.totalorder %s2112_s28, %s2112_s28 }
  0x1d   :  { %p1872_p11 = scmp.ne.s32.totalorder %s2112_s28, %s1871_s15  ;;  %p1877_p13 = scmp.lt.s32.totalorder %s1871_s15, %s1871_s15 }
  0x1f   :  { %p1878_p0 = por %p1877_p13, %p1876_p12 }
  0x21   :  { %p1879_p1 = pnand %p1878_p0, %p1872_p11 }
  0x23   :  { %1882 = shalt.err (!%p1879_p1)
}
  0x24   :  { %s2027_s1 = smov 128   ;;  %s2028_s26 = smov 8  }
  0x25   :  { %69 = dma.hbm_to_vmem [thread:$0]  %s2260_s4, 2048, %s2112_s28, [#allocation9], %s2027_s1, %s2027_s1, %s2028_s26  }
  0x26   :  { %s2029_s18 = smov [#allocation11]   ;;  %s2030_s20 = smov [#allocation2]  }
  0x27   :  { %s91_s19 = sshll.u32 %s2029_s18, 4  ;;  %s30_s21 = sshll.u32 %s2030_s20, 4  ;;  %s92_s19 = int_to_ptr.vmem [resolvable:$true] %s91_s19  ;;  %s31_s21 = int_to_ptr.vmem [resolvable:$true] %s30_s21 }
  0x28   :  { %s1883_s24 = scalar_lea.hbm %s2264_s8, 6144 }
  0x29   :  { %p1884_p2 = scmp.ne.s32.totalorder %s2264_s8, %s1883_s24  ;;  %p1887_p3 = scmp.lt.u32.totalorder %s1883_s24, %s2264_s8 }
  0x2b   :  { %p1889_p4 = pnand %p1887_p3, %p1884_p2 }
  0x2d   :  { %1892 = shalt.err (!%p1889_p4)
}
  0x2e   :  { %s1893_s4 = scalar_lea.vmem %s92_s19, 6144  ;;  %p1898_p6 = scmp.lt.s32.totalorder %s92_s19, %s92_s19 }
  0x2f   :  { %p1894_p5 = scmp.ne.s32.totalorder %s92_s19, %s1893_s4  ;;  %p1899_p7 = scmp.lt.s32.totalorder %s1893_s4, %s1893_s4 }
  0x31   :  { %p1900_p8 = por %p1899_p7, %p1898_p6 }
  0x33   :  { %p1901_p9 = pnand %p1900_p8, %p1894_p5 }
  0x35   :  { %1904 = shalt.err (!%p1901_p9)
}
  0x36   :  { %97 = dma.hbm_to_vmem [thread:$0]  %s2264_s8, 6144, %s92_s19, [#allocation12], %s2027_s1, %s2027_s1, %s2028_s26  }
  0x37   :  { %s1905_s17 = scalar_lea.hbm %s2256_s0, 16 }
  0x38   :  { %p1906_p10 = scmp.ne.s32.totalorder %s2256_s0, %s1905_s17  ;;  %p1909_p11 = scmp.lt.u32.totalorder %s1905_s17, %s2256_s0 }
  0x3a   :  { %p1911_p12 = pnand %p1909_p11, %p1906_p10 }
  0x3c   :  { %1914 = shalt.err (!%p1911_p12)
}
  0x3d   :  { %s1915_s24 = scalar_lea.vmem %s31_s21, 16  ;;  %s1919_s25 = scalar_lea.vmem %s31_s21, 32 }
  0x3e   :  { %p1916_p13 = scmp.ne.s32.totalorder %s31_s21, %s1915_s24  ;;  %p1920_p0 = scmp.lt.s32.totalorder %s31_s21, %s31_s21 }
  0x3f   :  { %p1921_p1 = scmp.lt.s32.totalorder %s1919_s25, %s1915_s24 }
  0x41   :  { %p1922_p2 = por %p1921_p1, %p1920_p0 }
  0x43   :  { %p1923_p3 = pnand %p1922_p2, %p1916_p13 }
  0x45   :  { %1926 = shalt.err (!%p1923_p3)
}
  0x46   :  { %33 = dma.hbm_to_vmem [thread:$0]  %s2256_s0, 16, %s31_s21, [#allocation3]  }
  0x47   :  { %s2031_s26 = smov [#allocation7]   ;;  %s1927_s30 = scalar_lea.hbm %s2258_s2, 1024 }
  0x48   :  { %s49_s19 = sshll.u32 %s2031_s26, 4  ;;  %p1928_p4 = scmp.ne.s32.totalorder %s2258_s2, %s1927_s30  ;;  %s50_s19 = int_to_ptr.vmem [resolvable:$true] %s49_s19 }
  0x49   :  { %p1931_p5 = scmp.lt.u32.totalorder %s1927_s30, %s2258_s2 }
  0x4b   :  { %p1933_p6 = pnand %p1931_p5, %p1928_p4 }
  0x4d   :  { %1936 = shalt.err (!%p1933_p6)
}
  0x4e   :  { %s1937_s16 = scalar_lea.vmem %s50_s19, 1024  ;;  %p1942_p8 = scmp.lt.s32.totalorder %s50_s19, %s50_s19 }
  0x4f   :  { %p1938_p7 = scmp.ne.s32.totalorder %s50_s19, %s1937_s16  ;;  %p1943_p9 = scmp.lt.s32.totalorder %s1937_s16, %s1937_s16 }
  0x51   :  { %p1944_p10 = por %p1943_p9, %p1942_p8 }
  0x53   :  { %p1945_p11 = pnand %p1944_p10, %p1938_p7 }
  0x55   :  { %1948 = shalt.err (!%p1945_p11)
}
  0x56   :  { %s2032_s0 = smov 64   ;;  %s2033_s21 = smov 4  }
  0x57   :  { %55 = dma.hbm_to_vmem [thread:$0]  %s2258_s2, 1024, %s50_s19, [#allocation6], %s2032_s0, %s2032_s0, %s2033_s21  }
  0x58   :  { %s2034_s20 = smov [#allocation10]   ;;  %s1949_s25 = scalar_lea.hbm %s2262_s6, 6144 }
  0x59   :  { %s77_s22 = sshll.u32 %s2034_s20, 4  ;;  %p1950_p12 = scmp.ne.s32.totalorder %s2262_s6, %s1949_s25  ;;  %s78_s22 = int_to_ptr.vmem [resolvable:$true] %s77_s22 }
  0x5a   :  { %p1953_p13 = scmp.lt.u32.totalorder %s1949_s25, %s2262_s6 }
  0x5c   :  { %p1955_p0 = pnand %p1953_p13, %p1950_p12 }
  0x5e   :  { %1958 = shalt.err (!%p1955_p0)
}
  0x5f   :  { %s1959_s29 = scalar_lea.vmem %s78_s22, 6144  ;;  %p1964_p2 = scmp.lt.s32.totalorder %s78_s22, %s78_s22 }
  0x60   :  { %p1960_p1 = scmp.ne.s32.totalorder %s78_s22, %s1959_s29  ;;  %p1965_p3 = scmp.lt.s32.totalorder %s1959_s29, %s1959_s29 }
  0x62   :  { %p1966_p4 = por %p1965_p3, %p1964_p2 }
  0x64   :  { %p1967_p5 = pnand %p1966_p4, %p1960_p1 }
  0x66   :  { %1970 = shalt.err (!%p1967_p5)
}
  0x67   :  { %s2035_s2 = smov 192   ;;  %s2036_s19 = smov 12  }
  0x68   :  { %83 = dma.hbm_to_vmem [thread:$0]  %s2262_s6, 6144, %s78_s22, [#allocation9], %s2035_s2, %s2035_s2, %s2036_s19  }
  0x69   :  { %s2037_s28 = smov [#allocation13]   ;;  %s1971_s17 = scalar_lea.hbm %s2266_s10, 2048 }
  0x6a   :  { %s105_s14 = sshll.u32 %s2037_s28, 4  ;;  %p1972_p6 = scmp.ne.s32.totalorder %s2266_s10, %s1971_s17  ;;  %s106_s14 = int_to_ptr.vmem [resolvable:$true] %s105_s14 }
  0x6b   :  { %p1975_p7 = scmp.lt.u32.totalorder %s1971_s17, %s2266_s10 }
  0x6d   :  { %p1977_p8 = pnand %p1975_p7, %p1972_p6 }
  0x6f   :  { %1980 = shalt.err (!%p1977_p8)
}
  0x70   :  { %s1981_s25 = scalar_lea.vmem %s106_s14, 2048  ;;  %p1986_p10 = scmp.lt.s32.totalorder %s106_s14, %s106_s14 }
  0x71   :  { %p1982_p9 = scmp.ne.s32.totalorder %s106_s14, %s1981_s25  ;;  %p1987_p11 = scmp.lt.s32.totalorder %s1981_s25, %s1981_s25 }
  0x73   :  { %p1988_p12 = por %p1987_p11, %p1986_p10 }
  0x75   :  { %p1989_p13 = pnand %p1988_p12, %p1982_p9 }
  0x77   :  { %1992 = shalt.err (!%p1989_p13)
}
  0x78   :  { %111 = dma.hbm_to_vmem [thread:$0]  %s2266_s10, 2048, %s106_s14, [#allocation12], %s2032_s0, %s2032_s0, %s2033_s21  }
  0x79   :  { %2015 = dma.done.wait [#allocation3], 16  }
  0x7a   :  { %2016 = vsyncadd [#allocation3], 4294967280 }
  0x7b   :  { %2017 = dma.done.wait [#allocation6], 1040  }
  0x7c   :  { %2018 = vsyncadd [#allocation6], 4294966256 }
  0x7d   :  { %2019 = dma.done.wait [#allocation9], 8192  }
  0x7e   :  { %2020 = vsyncadd [#allocation9], 4294959104 }
  0x7f   :  { %2021 = dma.done.wait [#allocation12], 8192  }
  0x80   :  { %2022 = vsyncadd [#allocation12], 4294959104  ;;  %v2038_v0 = vmov 0.0   ;;  %vm2039_vm0 = vmmov 0   ;;  %v1655_v1 = vld [vmem:[#allocation7] sm:$0xff]   ;;  %v1656_v2 = vld [vmem:[#allocation7 + $0x8] sm:$0xff]  }
  0x81   :  { %1612 = vmatprep.subr.bf16.mxu0 %v2038_v0  ;;  %1628 = vmatprep.mubr.msk.bf16.mxu0 %vm2039_vm0, %v2038_v0  ;;  %v1657_v3 = vld [vmem:[#allocation7 + $0x10] sm:$0xff]   ;;  %v1663_v4 = vld [vmem:[#allocation8 + $0x4] ss:$8 sps:$4 sm:$0xff]   ;;  %v1665_v5 = vld [vmem:[#allocation8] ss:$8 sps:$4 sm:$0xff]   ;;  %v2040_v26 = vmov 0  }
  0x82   :  { %1613 = vmatpush3.bf16.msra.mxu0 %v1655_v1  ;;  %v1658_v6 = vld [vmem:[#allocation7 + $0x18] sm:$0xff]   ;;  %358 = vmatprep.subr.bf16.mxu1 %v1663_v4  ;;  %v1669_v9 = vld [vmem:[#allocation8 + $0x24] ss:$8 sps:$4 sm:$0xff]   ;;  %v1671_v11 = vld [vmem:[#allocation8 + $0x20] ss:$8 sps:$4 sm:$0xff]   ;;  %vm1392_vm1 = vcmask 58368  }
  0x83   :  { %1614 = vmatprep.subr.bf16.mxu0 %v2038_v0  ;;  %v1666_v7 = vld [vmem:[#allocation8 + $0x14] ss:$8 sps:$4 sm:$0xff]   ;;  %359 = vmatpush1.bf16.msra.mxu1 %v1665_v5  ;;  %v1668_v8 = vld [vmem:[#allocation8 + $0x10] ss:$8 sps:$4 sm:$0xff]   ;;  %v1659_v10 = vld [vmem:[#allocation7 + $0x20] sm:$0xff]   ;;  %s2041_s27 = smov [#allocation14]  }
  0x84   :  { %360 = vmatprep.subr.bf16.mxu1 %v1666_v7  ;;  %v1660_v12 = vld [vmem:[#allocation7 + $0x28] sm:$0xff]   ;;  %v1672_v13 = vld [vmem:[#allocation8 + $0x34] ss:$8 sps:$4 sm:$0xff]   ;;  %v1674_v14 = vld [vmem:[#allocation8 + $0x30] ss:$8 sps:$4 sm:$0xff]   ;;  %390 = vmatprep.mubr.bf16.mxu1 %v2040_v26  ;;  %s1405_s29 = sshll.u32 %s2041_s27, 4  ;;  %s1406_s29 = int_to_ptr.vmem [resolvable:$true] %s1405_s29 }
  0x85   :  { %v1675_v15 = vld [vmem:[#allocation8 + $0x44] ss:$8 sps:$4 sm:$0xff]   ;;  %v1661_v16 = vld [vmem:[#allocation7 + $0x30] sm:$0xff]   ;;  %v1677_v17 = vld [vmem:[#allocation8 + $0x40] ss:$8 sps:$4 sm:$0xff]   ;;  %s1993_s2 = scalar_lea.vmem %s1406_s29, 32  ;;  %p1998_p1 = scmp.lt.s32.totalorder %s1406_s29, %s1406_s29 }
  0x86   :  { %1615 = vmatpush3.bf16.msra.mxu0 %v1656_v2  ;;  %v1678_v18 = vld [vmem:[#allocation8 + $0x54] ss:$8 sps:$4 sm:$0xff]   ;;  %v1680_v20 = vld [vmem:[#allocation8 + $0x50] ss:$8 sps:$4 sm:$0xff]   ;;  %v1681_v21 = vld [vmem:[#allocation8 + $0x64] ss:$8 sps:$4 sm:$0xff]   ;;  %p1994_p0 = scmp.ne.s32.totalorder %s1406_s29, %s1993_s2  ;;  %p1999_p2 = scmp.lt.s32.totalorder %s1993_s2, %s1993_s2 }
  0x87   :  { %1616 = vmatprep.subr.bf16.mxu0 %v2038_v0  ;;  %361 = vmatpush1.bf16.msra.mxu1 %v1668_v8  ;;  %v1662_v19 = vld [vmem:[#allocation7 + $0x38] sm:$0xff]   ;;  %v1683_v23 = vld [vmem:[#allocation8 + $0x60] ss:$8 sps:$4 sm:$0xff]   ;;  %v1689_v28 = vld [vmem:[#allocation10 + $0x4] ss:$12 sps:$4 sm:$0xff]  }
  0x88   :  { %362 = vmatprep.subr.bf16.mxu1 %v1669_v9  ;;  %v136_v22 = vld [vmem:[#allocation2] sm:$0x1]  ;;  %v1686_v25 = vld [vmem:[#allocation8 + $0x70] ss:$8 sps:$4 sm:$0xff]   ;;  %v1687_v27 = vld [vmem:[#allocation10] ss:$12 sps:$4 sm:$0xff]   ;;  %p2000_p3 = por %p1999_p2, %p1998_p1 }
  0x89   :  { %v1684_v24 = vld [vmem:[#allocation8 + $0x74] ss:$8 sps:$4 sm:$0xff]   ;;  %v1690_v30 = vld [vmem:[#allocation10 + $0x18] ss:$12 sps:$4 sm:$0xff]   ;;  %v1699_v37 = vld [vmem:[#allocation10 + $0x60] ss:$12 sps:$4 sm:$0xff]  }
  0x8a   :  { %1617 = vmatpush3.bf16.msra.mxu0 %v1657_v3  ;;  %v1692_v29 = vld [vmem:[#allocation10 + $0x1c] ss:$12 sps:$4 sm:$0xff]   ;;  %v1695_v31 = vld [vmem:[#allocation10 + $0x34] ss:$12 sps:$4 sm:$0xff]   ;;  %v1698_v34 = vld [vmem:[#allocation10 + $0x4c] ss:$12 sps:$4 sm:$0xff]   ;;  %p2001_p4 = pnand %p2000_p3, %p1994_p0 }
  0x8b   :  { %1618 = vmatprep.subr.bf16.mxu0 %v2038_v0  ;;  %363 = vmatpush1.bf16.msra.mxu1 %v1671_v11  ;;  %v1714_v32 = vld [vmem:[#allocation10 + $0xc8] ss:$12 sps:$4 sm:$0xff]   ;;  %v1693_v33 = vld [vmem:[#allocation10 + $0x30] ss:$12 sps:$4 sm:$0xff]   ;;  %v1702_v39 = vld [vmem:[#allocation10 + $0x78] ss:$12 sps:$4 sm:$0xff]  }
  0x8c   :  { %364 = vmatprep.subr.bf16.mxu1 %v1672_v13  ;;  %v1696_v35 = vld [vmem:[#allocation10 + $0x48] ss:$12 sps:$4 sm:$0xff]   ;;  %v1701_v36 = vld [vmem:[#allocation10 + $0x64] ss:$12 sps:$4 sm:$0xff]   ;;  %v1710_v42 = vld [vmem:[#allocation10 + $0xac] ss:$12 sps:$4 sm:$0xff]  }
  0x8d   :  { %v1704_v38 = vld [vmem:[#allocation10 + $0x7c] ss:$12 sps:$4 sm:$0xff]   ;;  %v1707_v40 = vld [vmem:[#allocation10 + $0x94] ss:$12 sps:$4 sm:$0xff]   ;;  %v1713_v44 = vld [vmem:[#allocation10 + $0xc4] ss:$12 sps:$4 sm:$0xff]  }
  0x8e   :  { %1619 = vmatpush3.bf16.msra.mxu0 %v1658_v6  ;;  %v1705_v41 = vld [vmem:[#allocation10 + $0x90] ss:$12 sps:$4 sm:$0xff]   ;;  %v1708_v43 = vld [vmem:[#allocation10 + $0xa8] ss:$12 sps:$4 sm:$0xff]   ;;  %v1711_v45 = vld [vmem:[#allocation10 + $0xc0] ss:$12 sps:$4 sm:$0xff]  }
  0x8f   :  { %1620 = vmatprep.subr.bf16.mxu0 %v2038_v0  ;;  %365 = vmatpush1.bf16.msra.mxu1 %v1674_v14  ;;  %v1718_v46 = vld [vmem:[#allocation10 + $0xdc] ss:$12 sps:$4 sm:$0xff]   ;;  %v1716_v47 = vld [vmem:[#allocation10 + $0xd8] ss:$12 sps:$4 sm:$0xff]   ;;  %v1723_v48 = vld [vmem:[#allocation10 + $0xf4] ss:$12 sps:$4 sm:$0xff]  }
  0x90   :  { %366 = vmatprep.subr.bf16.mxu1 %v1675_v15  ;;  %v1721_v49 = vld [vmem:[#allocation10 + $0xf0] ss:$12 sps:$4 sm:$0xff]   ;;  %v1728_v50 = vld [vmem:[#allocation10 + $0x10c] ss:$12 sps:$4 sm:$0xff]   ;;  %v1726_v51 = vld [vmem:[#allocation10 + $0x108] ss:$12 sps:$4 sm:$0xff]  }
  0x91   :  { %v1733_v52 = vld [vmem:[#allocation10 + $0x124] ss:$12 sps:$4 sm:$0xff]   ;;  %v1731_v53 = vld [vmem:[#allocation10 + $0x120] ss:$12 sps:$4 sm:$0xff]   ;;  %v1738_v54 = vld [vmem:[#allocation10 + $0x13c] ss:$12 sps:$4 sm:$0xff]  }
  0x92   :  { %1621 = vmatpush3.bf16.msra.mxu0 %v1659_v10  ;;  %v1736_v55 = vld [vmem:[#allocation10 + $0x138] ss:$12 sps:$4 sm:$0xff]   ;;  %v1715_v63 = vld [vmem:[#allocation10 + $0x8] ss:$12 sps:$4 sm:$0xff]   ;;  %v1719_v1 = vld [vmem:[#allocation10 + $0xe0] ss:$12 sps:$4 sm:$0xff]  }
  0x93   :  { %1622 = vmatprep.subr.bf16.mxu0 %v2038_v0  ;;  %367 = vmatpush1.bf16.msra.mxu1 %v1677_v17  ;;  %v1421_v56 = vld [vmem:[%s2259_s3] ss:$0 sm:$0xff]  ;;  %v1720_v2 = vld [vmem:[#allocation10 + $0x20] ss:$12 sps:$4 sm:$0xff]   ;;  %v1729_v5 = vld [vmem:[#allocation10 + $0x110] ss:$12 sps:$4 sm:$0xff]  }
  0x94   :  { %368 = vmatprep.subr.bf16.mxu1 %v1678_v18  ;;  %v1724_v3 = vld [vmem:[#allocation10 + $0xf8] ss:$12 sps:$4 sm:$0xff]   ;;  %v1730_v6 = vld [vmem:[#allocation10 + $0x50] ss:$12 sps:$4 sm:$0xff]   ;;  %v1734_v7 = vld [vmem:[#allocation10 + $0x128] ss:$12 sps:$4 sm:$0xff]  }
  0x95   :  { %v1725_v4 = vld [vmem:[#allocation10 + $0x38] ss:$12 sps:$4 sm:$0xff]   ;;  %v1735_v8 = vld [vmem:[#allocation10 + $0x68] ss:$12 sps:$4 sm:$0xff]   ;;  %v1739_v9 = vld [vmem:[#allocation10 + $0x140] ss:$12 sps:$4 sm:$0xff]  }
  0x96   :  { %1623 = vmatpush3.bf16.msra.mxu0 %v1660_v12  ;;  %v1740_v10 = vld [vmem:[#allocation10 + $0x80] ss:$12 sps:$4 sm:$0xff]   ;;  %v1744_v12 = vld [vmem:[#allocation10 + $0x158] ss:$12 sps:$4 sm:$0xff]   ;;  %v1741_v13 = vld [vmem:[#allocation10 + $0x150] ss:$12 sps:$4 sm:$0xff]  }
  0x97   :  { %1624 = vmatprep.subr.bf16.mxu0 %v2038_v0  ;;  %369 = vmatpush1.bf16.msra.mxu1 %v1680_v20  ;;  %v1743_v11 = vld [vmem:[#allocation10 + $0x154] ss:$12 sps:$4 sm:$0xff]   ;;  %v1745_v14 = vld [vmem:[#allocation10 + $0x98] ss:$12 sps:$4 sm:$0xff]   ;;  %v1750_v18 = vld [vmem:[#allocation10 + $0xb0] ss:$12 sps:$4 sm:$0xff]   ;;  %v268_v20 = vlaneseq }
  0x98   :  { %370 = vmatprep.subr.bf16.mxu1 %v1681_v21  ;;  %v1748_v15 = vld [vmem:[#allocation10 + $0x16c] ss:$12 sps:$4 sm:$0xff]   ;;  %v1746_v17 = vld [vmem:[#allocation10 + $0x168] ss:$12 sps:$4 sm:$0xff]  }
  0x99   :  { %v2213_v21 = vshrl.u32 %v268_v20, 7 }
  0x9a   :  { %1625 = vmatpush3.bf16.msra.mxu0 %v1661_v16  ;;  %v1749_v16 = vld [vmem:[#allocation10 + $0x170] ss:$12 sps:$4 sm:$0xff]  }
  0x9b   :  { %1626 = vmatprep.subr.bf16.mxu0 %v2038_v0  ;;  %371 = vmatpush1.bf16.msra.mxu1 %v1683_v23  ;;  %v266_v23 = vld [vmem:[%s2261_s5] sm:$0x3] }
  0x9c   :  { %372 = vmatprep.subr.bf16.mxu1 %v1684_v24  ;;  %v2222_v24 = vsub.s32 1, %v2213_v21 }
  0x9e   :  { %1627 = vmatpush3.bf16.msra.mxu0 %v1662_v19  ;;  %v1753_v19 = vld [vmem:[#allocation11 + $0x4] ss:$8 sps:$4 sm:$0xff]  }
  0x9f   :  { %373 = vmatpush1.bf16.msra.mxu1 %v1686_v25  ;;  %740 = vmatprep.subr.bf16.mxu0 %v1689_v28 }
  0xa0   :  { %1568 = vmatprep.subr.bf16.mxu1 %v1714_v32 }
  0xa1   :  { %1629 = vmatmul.mubr.bf16.vlgmr.msra.gmra.mrb[0].mxu0 %v136_v22  ;;  %v2216_v22 = vsub.s32 0, %v2213_v21 }
  0xa2   :  { %741 = vmatpush1.bf16.msra.mxu0 %v1687_v27  ;;  %v275_v27 = vrot.slane %v266_v23, %v2222_v24 }
  0xa3   :  { %742 = vmatprep.subr.bf16.mxu0 %v1692_v29  ;;  %v271_v25 = vrot.slane %v266_v23, %v2216_v22 }
  0xa6   :  { %743 = vmatpush1.bf16.msra.mxu0 %v1690_v30 }
  0xa7   :  { %744 = vmatprep.subr.bf16.mxu0 %v1695_v31 }
  0xaa   :  { %745 = vmatpush1.bf16.msra.mxu0 %v1693_v33 }
  0xab   :  { %746 = vmatprep.subr.bf16.mxu0 %v1698_v34 }
  0xae   :  { %747 = vmatpush1.bf16.msra.mxu0 %v1696_v35 }
  0xaf   :  { %748 = vmatprep.subr.bf16.mxu0 %v1701_v36 }
  0xb2   :  { %749 = vmatpush1.bf16.msra.mxu0 %v1699_v37  ;;  %v1751_v37 = vld [vmem:[#allocation11] ss:$8 sps:$4 sm:$0xff]  }
  0xb3   :  { %750 = vmatprep.subr.bf16.mxu0 %v1704_v38 }
  0xb6   :  { %751 = vmatpush1.bf16.msra.mxu0 %v1702_v39  ;;  %v1756_v39 = vld [vmem:[#allocation11 + $0x14] ss:$8 sps:$4 sm:$0xff]  }
  0xb7   :  { %752 = vmatprep.subr.bf16.mxu0 %v1707_v40  ;;  %v1754_v40 = vld [vmem:[#allocation11 + $0x10] ss:$8 sps:$4 sm:$0xff]  }
  0xba   :  { %753 = vmatpush1.bf16.msra.mxu0 %v1705_v41  ;;  %v1759_v41 = vld [vmem:[#allocation11 + $0x24] ss:$8 sps:$4 sm:$0xff]  }
  0xbb   :  { %754 = vmatprep.subr.bf16.mxu0 %v1710_v42  ;;  %v1757_v42 = vld [vmem:[#allocation11 + $0x20] ss:$8 sps:$4 sm:$0xff]  }
  0xbe   :  { %755 = vmatpush1.bf16.msra.mxu0 %v1708_v43  ;;  %v1762_v43 = vld [vmem:[#allocation11 + $0x34] ss:$8 sps:$4 sm:$0xff]  }
  0xbf   :  { %756 = vmatprep.subr.bf16.mxu0 %v1713_v44  ;;  %v1760_v44 = vld [vmem:[#allocation11 + $0x30] ss:$8 sps:$4 sm:$0xff]  }
  0xc2   :  { %757 = vmatpush1.bf16.msra.mxu0 %v1711_v45  ;;  %v1765_v45 = vld [vmem:[#allocation11 + $0x44] ss:$8 sps:$4 sm:$0xff]  }
  0xc3   :  { %758 = vmatprep.subr.bf16.mxu0 %v1718_v46  ;;  %v1763_v46 = vld [vmem:[#allocation11 + $0x40] ss:$8 sps:$4 sm:$0xff]  }
  0xc6   :  { %759 = vmatpush1.bf16.msra.mxu0 %v1716_v47  ;;  %v1768_v47 = vld [vmem:[#allocation11 + $0x54] ss:$8 sps:$4 sm:$0xff]  }
  0xc7   :  { %760 = vmatprep.subr.bf16.mxu0 %v1723_v48  ;;  %v1766_v48 = vld [vmem:[#allocation11 + $0x50] ss:$8 sps:$4 sm:$0xff]  }
  0xca   :  { %761 = vmatpush1.bf16.msra.mxu0 %v1721_v49  ;;  %v1771_v49 = vld [vmem:[#allocation11 + $0x64] ss:$8 sps:$4 sm:$0xff]  }
  0xcb   :  { %762 = vmatprep.subr.bf16.mxu0 %v1728_v50  ;;  %v1769_v50 = vld [vmem:[#allocation11 + $0x60] ss:$8 sps:$4 sm:$0xff]  }
  0xce   :  { %763 = vmatpush1.bf16.msra.mxu0 %v1726_v51  ;;  %v1774_v51 = vld [vmem:[#allocation11 + $0x74] ss:$8 sps:$4 sm:$0xff]  }
  0xcf   :  { %764 = vmatprep.subr.bf16.mxu0 %v1733_v52  ;;  %v1772_v52 = vld [vmem:[#allocation11 + $0x70] ss:$8 sps:$4 sm:$0xff]  }
  0xd2   :  { %765 = vmatpush1.bf16.msra.mxu0 %v1731_v53  ;;  %v1777_v53 = vld [vmem:[#allocation11 + $0x84] ss:$8 sps:$4 sm:$0xff]  }
  0xd3   :  { %766 = vmatprep.subr.bf16.mxu0 %v1738_v54  ;;  %v1775_v54 = vld [vmem:[#allocation11 + $0x80] ss:$8 sps:$4 sm:$0xff]  }
  0xd6   :  { %767 = vmatpush1.bf16.msra.mxu0 %v1736_v55  ;;  %v1780_v55 = vld [vmem:[#allocation11 + $0x94] ss:$8 sps:$4 sm:$0xff]  }
  0xd7   :  { %768 = vmatprep.subr.bf16.mxu0 %v1743_v11  ;;  %v1828_v11 = vld [vmem:[#allocation13 + $0x10] sm:$0xff]  }
  0xda   :  { %769 = vmatpush1.bf16.msra.mxu0 %v1741_v13  ;;  %v1830_v13 = vld [vmem:[#allocation13 + $0x18] sm:$0xff]  }
  0xdb   :  { %770 = vmatprep.subr.bf16.mxu0 %v1748_v15  ;;  %v1832_v15 = vld [vmem:[#allocation13 + $0x20] sm:$0xff]  }
  0xde   :  { %771 = vmatpush1.bf16.msra.mxu0 %v1746_v17  ;;  %v1834_v17 = vld [vmem:[#allocation13 + $0x28] sm:$0xff]  }
 0x174   :  { %v242_v57 = vpop.f32.mrb[0].mxu0 }
 0x175   :  { %v243_v58 = vadd.f32 %v1421_v56, %v242_v57  ;;  %v1630_v59 = vpop.f32.mrb[1].mxu0  ;;  %v1778_v56 = vld [vmem:[#allocation11 + $0x90] ss:$8 sps:$4 sm:$0xff]   ;;  %v1783_v57 = vld [vmem:[#allocation11 + $0xa4] ss:$8 sps:$4 sm:$0xff]  }
 0x176   :  { %v245_v60 = vpop.f32.mrb[2].mxu0  ;;  %v1786_v59 = vld [vmem:[#allocation11 + $0xb4] ss:$8 sps:$4 sm:$0xff]  }
 0x177   :  { %v248_v61 = vmax.f32 %v243_v58, 0.0  ;;  %v1631_v62 = vpop.f32.mrb[3].mxu0  ;;  %v1781_v58 = vld [vmem:[#allocation11 + $0xa0] ss:$8 sps:$4 sm:$0xff]   ;;  %v1784_v60 = vld [vmem:[#allocation11 + $0xb0] ss:$8 sps:$4 sm:$0xff]  }
 0x178   :  { %v1787_v62 = vld [vmem:[#allocation11 + $0xc0] ss:$8 sps:$4 sm:$0xff]  }
 0x179   :  { %v249_v0 = vpack.c.bf16 %v248_v61, %v248_v61  ;;  %v1789_v61 = vld [vmem:[#allocation11 + $0xc4] ss:$8 sps:$4 sm:$0xff]  }
 0x17b   :  { %391 = vmatmul.mubr.bf16.vlgmr.msra.gmra.mrb[0].mxu1 %v249_v0  ;;  %v1790_v0 = vld [vmem:[#allocation11 + $0xd0] ss:$8 sps:$4 sm:$0xff]  }
 0x17c   :  { %1569 = vmatpush3.bf16.msra.mxu1 %v1715_v63  ;;  %v1792_v63 = vld [vmem:[#allocation11 + $0xd4] ss:$8 sps:$4 sm:$0xff]  }
 0x17d   :  { %1570 = vmatprep.subr.bf16.mxu1 %v1719_v1  ;;  %v1795_v1 = vld [vmem:[#allocation11 + $0xe4] ss:$8 sps:$4 sm:$0xff]  }
 0x180   :  { %1571 = vmatpush3.bf16.msra.mxu1 %v1720_v2  ;;  %v1793_v2 = vld [vmem:[#allocation11 + $0xe0] ss:$8 sps:$4 sm:$0xff]  }
 0x181   :  { %1572 = vmatprep.subr.bf16.mxu1 %v1724_v3  ;;  %v1798_v3 = vld [vmem:[#allocation11 + $0xf4] ss:$8 sps:$4 sm:$0xff]  }
 0x184   :  { %1573 = vmatpush3.bf16.msra.mxu1 %v1725_v4  ;;  %v1796_v4 = vld [vmem:[#allocation11 + $0xf0] ss:$8 sps:$4 sm:$0xff]  }
 0x185   :  { %1574 = vmatprep.subr.bf16.mxu1 %v1729_v5  ;;  %v1801_v5 = vld [vmem:[#allocation11 + $0x104] ss:$8 sps:$4 sm:$0xff]  }
 0x188   :  { %1575 = vmatpush3.bf16.msra.mxu1 %v1730_v6  ;;  %v1823_v6 = vld [vmem:[#allocation13 + $0x40] sm:$0xff]  }
 0x189   :  { %1576 = vmatprep.subr.bf16.mxu1 %v1734_v7  ;;  %v1824_v7 = vld [vmem:[#allocation13] sm:$0xff]   ;;  %1590 = vmatprep.subr.bf16.mxu0 %v1823_v6 }
 0x18c   :  { %1577 = vmatpush3.bf16.msra.mxu1 %v1735_v8  ;;  %v1825_v8 = vld [vmem:[#allocation13 + $0x48] sm:$0xff]  }
 0x18d   :  { %1578 = vmatprep.subr.bf16.mxu1 %v1739_v9  ;;  %v1826_v9 = vld [vmem:[#allocation13 + $0x8] sm:$0xff]  }
 0x190   :  { %1579 = vmatpush3.bf16.msra.mxu1 %v1740_v10  ;;  %v1827_v10 = vld [vmem:[#allocation13 + $0x50] sm:$0xff]  }
 0x191   :  { %1580 = vmatprep.subr.bf16.mxu1 %v1744_v12  ;;  %v1829_v12 = vld [vmem:[#allocation13 + $0x58] sm:$0xff]  }
 0x194   :  { %1581 = vmatpush3.bf16.msra.mxu1 %v1745_v14  ;;  %v1831_v14 = vld [vmem:[#allocation13 + $0x60] sm:$0xff]  }
 0x195   :  { %1582 = vmatprep.subr.bf16.mxu1 %v1749_v16  ;;  %v1833_v16 = vld [vmem:[#allocation13 + $0x68] sm:$0xff]  }
 0x198   :  { %1583 = vmatpush3.bf16.msra.mxu1 %v1750_v18  ;;  %v467_v18 = vld [vmem:[%s2263_s7] sm:$0x7] }
 0x199   :  { %1127 = vmatprep.subr.bf16.mxu1 %v1753_v19  ;;  %v472_v19 = vrot.slane %v467_v18, %v2216_v22  ;;  %v476_v20 = vrot.slane %v467_v18, %v2222_v24 }
 0x24e   :  { %v392_v28 = vpop.f32.mrb[0].mxu1 }
 0x24f   :  { %v393_v29 = vadd.f32 %v392_v28, %v271_v25  ;;  %v394_v30 = vpop.f32.mrb[1].mxu1 }
 0x250   :  { %v395_v31 = vadd.f32 %v394_v30, %v275_v27  ;;  %v396_v32 = vpop.f32.mrb[2].mxu1 }
 0x251   :  { %v399_v33 = vmax.f32 %v393_v29, 0.0  ;;  %v397_v34 = vpop.f32.mrb[3].mxu1 }
 0x252   :  { %v400_v35 = vmax.f32 %v395_v31, 0.0 }
 0x253   :  { %v401_v38 = vpack.c.bf16 %v399_v33, %v399_v33 }
 0x254   :  { %v402_v36 = vpack.c.bf16 %v400_v35, %v400_v35 }
 0x256   :  { %772 = vmatprep.mubr.bf16.mxu0 %v402_v36  ;;  %813 = vmatprep.mubr.bf16.mxu1 %v402_v36 }
 0x257   :  { %773 = vmatmul.mubr.bf16.vlgmr.msra.gmra.mrb[4].mxu0 %v401_v38  ;;  %814 = vmatmul.mubr.bf16.vlgmr.msra.gmra.mrb[4].mxu1 %v401_v38 }
 0x258   :  { %1128 = vmatpush1.bf16.msra.mxu1 %v1751_v37  ;;  %1591 = vmatpush3.bf16.msra.mxu0 %v1824_v7 }
 0x259   :  { %1129 = vmatprep.subr.bf16.mxu1 %v1756_v39  ;;  %1592 = vmatprep.subr.bf16.mxu0 %v1825_v8  ;;  %v1799_v39 = vld [vmem:[#allocation11 + $0x100] ss:$8 sps:$4 sm:$0xff]  }
 0x25c   :  { %1130 = vmatpush1.bf16.msra.mxu1 %v1754_v40  ;;  %1593 = vmatpush3.bf16.msra.mxu0 %v1826_v9 }
 0x25d   :  { %1131 = vmatprep.subr.bf16.mxu1 %v1759_v41  ;;  %1594 = vmatprep.subr.bf16.mxu0 %v1827_v10  ;;  %v1804_v41 = vld [vmem:[#allocation11 + $0x114] ss:$8 sps:$4 sm:$0xff]  }
 0x260   :  { %1132 = vmatpush1.bf16.msra.mxu1 %v1757_v42  ;;  %1595 = vmatpush3.bf16.msra.mxu0 %v1828_v11  ;;  %v1802_v42 = vld [vmem:[#allocation11 + $0x110] ss:$8 sps:$4 sm:$0xff]   ;;  %v1388_v11 = vld [vmem:[#allocation5] sm:$0x1] }
 0x261   :  { %1133 = vmatprep.subr.bf16.mxu1 %v1762_v43  ;;  %1596 = vmatprep.subr.bf16.mxu0 %v1829_v12  ;;  %v1807_v43 = vld [vmem:[#allocation11 + $0x124] ss:$8 sps:$4 sm:$0xff]   ;;  %v1389_v12 = vunpack.c.l.bf16 %v1388_v11 }
 0x264   :  { %1134 = vmatpush1.bf16.msra.mxu1 %v1760_v44  ;;  %1597 = vmatpush3.bf16.msra.mxu0 %v1830_v13  ;;  %v1805_v44 = vld [vmem:[#allocation11 + $0x120] ss:$8 sps:$4 sm:$0xff]  }
 0x265   :  { %1135 = vmatprep.subr.bf16.mxu1 %v1765_v45  ;;  %1598 = vmatprep.subr.bf16.mxu0 %v1831_v14  ;;  %v1810_v45 = vld [vmem:[#allocation11 + $0x134] ss:$8 sps:$4 sm:$0xff]  }
 0x268   :  { %1136 = vmatpush1.bf16.msra.mxu1 %v1763_v46  ;;  %1599 = vmatpush3.bf16.msra.mxu0 %v1832_v15  ;;  %v1808_v46 = vld [vmem:[#allocation11 + $0x130] ss:$8 sps:$4 sm:$0xff]  }
 0x269   :  { %1137 = vmatprep.subr.bf16.mxu1 %v1768_v47  ;;  %1600 = vmatprep.subr.bf16.mxu0 %v1833_v16  ;;  %v1813_v47 = vld [vmem:[#allocation11 + $0x144] ss:$8 sps:$4 sm:$0xff]   ;;  %v1390_v16 = vmul.f32 1e+09, %v1389_v12 }
 0x26c   :  { %1138 = vmatpush1.bf16.msra.mxu1 %v1766_v48  ;;  %1601 = vmatpush3.bf16.msra.mxu0 %v1834_v17  ;;  %v1811_v48 = vld [vmem:[#allocation11 + $0x140] ss:$8 sps:$4 sm:$0xff]  }
 0x26d   :  { %1139 = vmatprep.subr.bf16.mxu1 %v1771_v49  ;;  %v479_v49 = vsub.s32 2, %v2213_v21  ;;  %v1835_v21 = vld [vmem:[#allocation13 + $0x70] sm:$0xff]  }
 0x26e   :  { %1602 = vmatprep.subr.bf16.mxu0 %v1835_v21 }
 0x270   :  { %1140 = vmatpush1.bf16.msra.mxu1 %v1769_v50  ;;  %v1816_v50 = vld [vmem:[#allocation11 + $0x154] ss:$8 sps:$4 sm:$0xff]  }
 0x271   :  { %1141 = vmatprep.subr.bf16.mxu1 %v1774_v51  ;;  %v1814_v51 = vld [vmem:[#allocation11 + $0x150] ss:$8 sps:$4 sm:$0xff]  }
 0x274   :  { %1142 = vmatpush1.bf16.msra.mxu1 %v1772_v52  ;;  %v480_v52 = vrot.slane %v467_v18, %v479_v49 }
 0x275   :  { %1143 = vmatprep.subr.bf16.mxu1 %v1777_v53  ;;  %v1817_v53 = vld [vmem:[#allocation11 + $0x160] ss:$8 sps:$4 sm:$0xff]  }
 0x278   :  { %1144 = vmatpush1.bf16.msra.mxu1 %v1775_v54 }
 0x279   :  { %1145 = vmatprep.subr.bf16.mxu1 %v1780_v55  ;;  %v1822_v55 = vld [vmem:[#allocation11 + $0x174] ss:$8 sps:$4 sm:$0xff]  }
 0x27c   :  { %1146 = vmatpush1.bf16.msra.mxu1 %v1778_v56  ;;  %v1820_v56 = vld [vmem:[#allocation11 + $0x170] ss:$8 sps:$4 sm:$0xff]  }
 0x27d   :  { %1147 = vmatprep.subr.bf16.mxu1 %v1783_v57 }
 0x280   :  { %1148 = vmatpush1.bf16.msra.mxu1 %v1781_v58 }
 0x281   :  { %1149 = vmatprep.subr.bf16.mxu1 %v1786_v59  ;;  %v1836_v59 = vld [vmem:[#allocation13 + $0x30] sm:$0xff]  }
 0x282   :  { %1603 = vmatpush3.bf16.msra.mxu0 %v1836_v59 }
 0x284   :  { %1150 = vmatpush1.bf16.msra.mxu1 %v1784_v60  ;;  %v1837_v60 = vld [vmem:[#allocation13 + $0x78] sm:$0xff]  }
 0x285   :  { %1151 = vmatprep.subr.bf16.mxu1 %v1789_v61  ;;  %v1838_v61 = vld [vmem:[#allocation13 + $0x38] sm:$0xff]   ;;  %1604 = vmatprep.subr.bf16.mxu0 %v1837_v60 }
 0x286   :  { %1605 = vmatpush3.bf16.msra.mxu0 %v1838_v61 }
 0x288   :  { %1152 = vmatpush1.bf16.msra.mxu1 %v1787_v62  ;;  %v875_v62 = vld [vmem:[%s2265_s9] sm:$0x3] }
 0x289   :  { %1153 = vmatprep.subr.bf16.mxu1 %v1792_v63  ;;  %v880_v63 = vrot.slane %v875_v62, %v2216_v22  ;;  %v1542_v22 = vld [vmem:[%s2267_s11] ss:$0 sm:$0xff] }
 0x28c   :  { %1154 = vmatpush1.bf16.msra.mxu1 %v1790_v0  ;;  %v884_v0 = vrot.slane %v875_v62, %v2222_v24 }
 0x28d   :  { %1155 = vmatprep.subr.bf16.mxu1 %v1795_v1 }
 0x290   :  { %1156 = vmatpush1.bf16.msra.mxu1 %v1793_v2 }
 0x291   :  { %1157 = vmatprep.subr.bf16.mxu1 %v1798_v3 }
 0x294   :  { %1158 = vmatpush1.bf16.msra.mxu1 %v1796_v4 }
 0x295   :  { %1168 = vmatprep.subr.bf16.mxu1 %v1801_v5 }
 0x32a   :  { %v774_v23 = vpop.f32.mrb[4].mxu0  ;;  %v1584_v25 = vpop.f32.mrb[4].mxu1 }
 0x32b   :  { %v775_v27 = vadd.f32 %v774_v23, %v472_v19  ;;  %v776_v28 = vpop.f32.mrb[5].mxu0  ;;  %v1585_v29 = vpop.f32.mrb[5].mxu1 }
 0x32c   :  { %v777_v30 = vadd.f32 %v776_v28, %v476_v20  ;;  %v1586_v31 = vadd.f32 %v1585_v29, %v1584_v25  ;;  %v778_v32 = vpop.f32.mrb[6].mxu0  ;;  %v1587_v33 = vpop.f32.mrb[6].mxu1 }
 0x32d   :  { %v821_v34 = vmax.f32 %v775_v27, 0.0  ;;  %v779_v35 = vpop.f32.mrb[7].mxu0  ;;  %v1588_v36 = vpop.f32.mrb[7].mxu1 }
 0x32e   :  { %v822_v37 = vmax.f32 %v777_v30, 0.0  ;;  %v816_v54 = vadd.f32 %v1586_v31, %v480_v52 }
 0x32f   :  { %v824_v40 = vpack.c.bf16 %v821_v34, %v821_v34 }
 0x330   :  { %v825_v38 = vpack.c.bf16 %v822_v37, %v822_v37  ;;  %v823_v57 = vmax.f32 %v816_v54, 0.0 }
 0x332   :  { %1159 = vmatprep.mubr.bf16.mxu1 %v825_v38  ;;  %v826_v58 = vpack.c.bf16 %v823_v57, %v823_v57 }
 0x333   :  { %1160 = vmatmul.mubr.bf16.vlgmr.msra.gmra.mrb[8].mxu1 %v824_v40 }
 0x334   :  { %1169 = vmatpush1.bf16.msra.mxu1 %v1799_v39  ;;  %1200 = vmatprep.mubr.bf16.mxu1 %v2040_v26  ;;  %v1819_v26 = vld [vmem:[#allocation11 + $0x164] ss:$8 sps:$4 sm:$0xff]  }
 0x335   :  { %1170 = vmatprep.subr.bf16.mxu1 %v1804_v41 }
 0x338   :  { %1171 = vmatpush1.bf16.msra.mxu1 %v1802_v42 }
 0x339   :  { %1172 = vmatprep.subr.bf16.mxu1 %v1807_v43 }
 0x33c   :  { %1173 = vmatpush1.bf16.msra.mxu1 %v1805_v44 }
 0x33d   :  { %1174 = vmatprep.subr.bf16.mxu1 %v1810_v45 }
 0x340   :  { %1175 = vmatpush1.bf16.msra.mxu1 %v1808_v46 }
 0x341   :  { %1176 = vmatprep.subr.bf16.mxu1 %v1813_v47 }
 0x344   :  { %1177 = vmatpush1.bf16.msra.mxu1 %v1811_v48 }
 0x345   :  { %1178 = vmatprep.subr.bf16.mxu1 %v1816_v50 }
 0x348   :  { %1179 = vmatpush1.bf16.msra.mxu1 %v1814_v51 }
 0x349   :  { %1180 = vmatprep.subr.bf16.mxu1 %v1819_v26 }
 0x34c   :  { %1181 = vmatpush1.bf16.msra.mxu1 %v1817_v53 }
 0x34d   :  { %1182 = vmatprep.subr.bf16.mxu1 %v1822_v55 }
 0x350   :  { %1183 = vmatpush1.bf16.msra.mxu1 %v1820_v56 }
 0x353   :  { %1201 = vmatmul.mubr.bf16.vlgmr.msra.gmra.mrb[8].mxu1 %v826_v58 }
 0x426   :  { %v1202_v1 = vpop.f32.mrb[8].mxu1 }
 0x427   :  { %v1632_v2 = vadd.f32 %v1202_v1, %v880_v63  ;;  %v1204_v3 = vpop.f32.mrb[9].mxu1 }
 0x428   :  { %v1633_v4 = vadd.f32 %v1204_v3, %v884_v0  ;;  %v1206_v5 = vpop.f32.mrb[10].mxu1 }
 0x429   :  { %v1209_v6 = vmax.f32 %v1632_v2, 0.0  ;;  %v1207_v7 = vpop.f32.mrb[11].mxu1 }
 0x42a   :  { %v1210_v8 = vmax.f32 %v1633_v4, 0.0 }
 0x42b   :  { %v1211_v10 = vpack.c.bf16 %v1209_v6, %v1209_v6 }
 0x42c   :  { %v1212_v9 = vpack.c.bf16 %v1210_v8, %v1210_v8 }
 0x42e   :  { %1380 = vmatprep.mubr.bf16.mxu0 %v1212_v9 }
 0x42f   :  { %1381 = vmatmul.mubr.bf16.vlgmr.msra.gmra.mrb[8].mxu0 %v1211_v10 }
 0x502   :  { %v1606_v13 = vpop.f32.mrb[8].mxu0 }
 0x503   :  { %v1607_v24 = vpop.f32.mrb[9].mxu0 }
 0x504   :  { %v1608_v14 = vadd.f32 %v1607_v24, %v1606_v13  ;;  %v1609_v15 = vpop.f32.mrb[10].mxu0 }
 0x505   :  { %v1610_v17 = vpop.f32.mrb[11].mxu0 }
 0x506   :  { %v1383_v18 = vadd.f32 %v1608_v14, %v1542_v22 }
 0x508   :  { %v1391_v19 = vadd.f32 %v1390_v16, %v1383_v18 }
 0x50a   :  { %v1394_v20 = vsel %vm1392_vm1, %v1391_v19, -inf  ;;  %1393 = vst.msk [vmem:[#allocation14] sm:$0x3] %vm1392_vm1, %v1391_v19 }
 0x50b   :  { %1395 = vmax.xlane.f32.xlu0 %v1394_v20 }
 0x50c   :  { %2004 = shalt.err (!%p2001_p4)
}
 0x50d   :  { %s2005_s30 = scalar_lea.hbm %s2268_s12, 32 }
 0x50e   :  { %p2006_p5 = scmp.ne.s32.totalorder %s2268_s12, %s2005_s30  ;;  %p2009_p6 = scmp.lt.u32.totalorder %s2005_s30, %s2268_s12 }
 0x510   :  { %p2011_p7 = pnand %p2009_p6, %p2006_p5 }
 0x512   :  { %2014 = shalt.err (!%p2011_p7)
}
 0x513   :  { %1408 = dma.vmem_to_hbm [thread:$0]  %s1406_s29, 32, %s2268_s12, [#allocation4]   ;;  %vm1397_vm2 = vcmask 1024  }
 0x598   :  { %v1396_v23 = vpop.xlane.xlu0 %1395 }
 0x599   :  { %1398 = vst.msk [vmem:[%s2269_s13] sm:$0x3] %vm1397_vm2, %v1396_v23 }
 0x59a   :  { %2023 = dma.done.wait [#allocation4], 32  }
 0x59b   :  { %2024 = vsyncadd [#allocation4], 4294967264 }
 0x59c   :  { %1416 = vsyncpa [#allocation3], 1 }
 0x59d   :  { %1417 = vsyncpa [#allocation6], 1 }
 0x59e   :  { %1418 = vsyncpa [#allocation9], 1 }
 0x59f   :  { %1419 = vsyncpa [#allocation12], 1 }
 0x5a0   :  { %1420 = vsyncpa [#allocation4], 1 }

</bundles_post_ra>
